<compile_context>
chip_gen: v7x
topology: tpu7x:2x2x1
jax: 0.10.0
libtpu: 0.0.40
codegen_flags: <defaults>
</compile_context>

<pallas_src>
import functools

import jax
import jax.numpy as jnp
import numpy as np
from jax.experimental import pallas as pl
from jax.experimental.pallas import tpu as pltpu


def _static_loss_kernel(w_ref, x_ref, t_ref, loss_ref, cnt_ref, *,
                        gamma, eps, ignore):
    j = pl.program_id(1)

    @pl.when(j == 0)
    def _():
        loss_ref[...] = jnp.zeros_like(loss_ref)
        cnt_ref[...] = jnp.zeros_like(cnt_ref)

    x = x_ref[0].astype(jnp.float32)        # (C, TN) logits, class on sublanes
    t = t_ref[0]                            # (1, TN) int32 labels, lane-dense
    w = w_ref[...]                          # (C, 1)  f32 class weights

    c, tn = x.shape
    valid = t != ignore                     # (1, TN) bool; also masks padded
                                            # tail / garbage partial-block cols

    # numerically stable softmax pieces over the class (sublane) axis
    m = jnp.max(x, axis=0, keepdims=True)   # (1, TN)
    e = jnp.exp(x - m)                      # (C, TN)  (EUP)
    s = jnp.sum(e, axis=0, keepdims=True)   # (1, TN)  (>= 1, never zero)

    # one-hot select, identical to torch's (w * probs * onehot).max(1)[0]
    classes = jax.lax.broadcasted_iota(jnp.int32, (c, tn), 0)
    sel = jnp.where(classes == t, w * e, 0.0)             # (C, TN)
    p = jnp.max(sel, axis=0, keepdims=True) * pl.reciprocal(s, approx=False)

    p = jnp.clip(p, eps, 1.0 - eps)
    log_p = jnp.log(p)
    omp = 1.0 - p
    if float(gamma) == 1.0:                 # default path: no pow at all
        focal = omp
    elif float(gamma) == int(gamma) and 0 <= int(gamma) <= 4:
        focal = jnp.ones_like(omp)
        for _ in range(int(gamma)):
            focal = focal * omp
    else:
        focal = jnp.power(omp, gamma)
    batch_loss = -focal * log_p                           # (1, TN)
    batch_loss = jnp.where(valid, batch_loss, 0.0)

    # lane-dense accumulation into the VMEM-resident output blocks
    loss_ref[0] = loss_ref[0] + batch_loss
    cnt_ref[0] = cnt_ref[0] + valid.astype(jnp.float32)


def static_loss(logits_nchw, target_bhw, weights, *, gamma=1.0, eps=1e-7,
                ignore=255, size_average=True, tile_n=8192):
    """Pallas implementation of StaticLoss.forward (non-raw branch)."""
    B, C, H, W = logits_nchw.shape
    hw = H * W

    # Keep logits in native class-major layout (no transpose, no dtype upcast,
    # no full-array pad -> logits are streamed from HBM exactly once).
    x = logits_nchw.reshape(B, C, hw)
    t = target_bhw.reshape(B, 1, hw).astype(jnp.int32)
    w = jnp.asarray(weights, dtype=jnp.float32).reshape(C, 1)

    # VMEM-aware lane-tile size: keep the double-buffered f32 logits tile a few
    # MiB even for large class counts, lane-multiple, and no larger than needed.
    c_pad = max(8, ((C + 7) // 8) * 8)          # sublane-padded class count
    budget = 4 * 1024 * 1024                    # ~4 MiB for the logits buffers
    tn_cap = max(512, (budget // (2 * c_pad * 4)) // 128 * 128)
    tn = max(128, min(int(tile_n), tn_cap, pl.cdiv(hw, 128) * 128))
    n_tiles = pl.cdiv(hw, tn)
    n_pad = n_tiles * tn
    if n_pad != hw:
        # only the (tiny) target array is padded; padded pixels carry `ignore`
        t = jnp.pad(t, ((0, 0), (0, 0), (0, n_pad - hw)), constant_values=ignore)

    kernel = functools.partial(_static_loss_kernel, gamma=gamma, eps=eps,
                               ignore=ignore)

    loss_part, cnt_part = pl.pallas_call(
        kernel,
        out_shape=(jax.ShapeDtypeStruct((B, 1, tn), jnp.float32),
                   jax.ShapeDtypeStruct((B, 1, tn), jnp.float32)),
        grid_spec=pltpu.PrefetchScalarGridSpec(
            num_scalar_prefetch=0,
            grid=(B, n_tiles),
            in_specs=[
                pl.BlockSpec((C, 1), lambda b, j: (0, 0)),         # weights
                pl.BlockSpec((1, C, tn), lambda b, j: (b, 0, j)),  # logits tile
                pl.BlockSpec((1, 1, tn), lambda b, j: (b, 0, j)),  # target tile
            ],
            out_specs=(
                pl.BlockSpec((1, 1, tn), lambda b, j: (b, 0, 0)),  # loss partials
                pl.BlockSpec((1, 1, tn), lambda b, j: (b, 0, 0)),  # count partials
            ),
        ),
        compiler_params=pltpu.CompilerParams(
            dimension_semantics=("parallel", "arbitrary")),
    )(w, x, t)

    loss_sum = jnp.sum(loss_part)
    if size_average:
        # NOTE: if every pixel is `ignore` this divides by zero (NaN), matching
        # PyTorch's mean() over an empty selection.
        return loss_sum / jnp.sum(cnt_part)
    return loss_sum


def static_loss_ref(logits_nchw, target_bhw, weights, *, gamma=1.0, eps=1e-7,
                    ignore=255):
    """Pure-JAX reference mirroring the PyTorch forward (non-raw branch)."""
    B, C, H, W = logits_nchw.shape
    x = jnp.transpose(logits_nchw, (0, 2, 3, 1)).reshape(-1, C).astype(jnp.float32)
    t = target_bhw.reshape(-1)
    valid = t != ignore
    probs = jax.nn.softmax(x, axis=1)
    onehot = (jnp.arange(C)[None, :] == t[:, None]).astype(jnp.float32)
    p = jnp.max(jnp.asarray(weights)[None, :] * probs * onehot, axis=1)
    p = jnp.clip(p, eps, 1.0 - eps)
    bl = -jnp.power(1.0 - p, gamma) * jnp.log(p)
    return jnp.sum(jnp.where(valid, bl, 0.0)) / jnp.sum(valid.astype(jnp.float32))


# TODO(synk): the `raw=True` branch (num_classes < 9) relies on in-place aliased
# neighbor shifts of `target` in PyTorch (all eight names alias the same tensor,
# so the shifts compound); default num_classes=9 never takes it, so it is not
# reproduced here.

if __name__ == "__main__":
    key = jax.random.PRNGKey(0)
    k1, k2, k3 = jax.random.split(key, 3)

    B, C, H, W = 2, 9, 16, 16          # num_classes=9 -> raw=False
    logits = jax.random.normal(k1, (B, C, H, W), dtype=jnp.float32)
    target = jax.random.randint(k2, (B, H, W), 0, C, dtype=jnp.int32)
    # sprinkle some ignore=255 labels to exercise the valid-mask path
    ignore_mask = jax.random.bernoulli(k3, 0.1, (B, H, W))
    target = jnp.where(ignore_mask, jnp.int32(255), target)

    # deterministic per-class weights (module's `weight` arg)
    weights = 0.5 + 0.1 * jnp.arange(C, dtype=jnp.float32)

    loss = static_loss(logits, target, weights)
    loss = jax.block_until_ready(loss)

    loss_ref = jax.block_until_ready(static_loss_ref(logits, target, weights))
    np.testing.assert_allclose(np.asarray(loss), np.asarray(loss_ref),
                               rtol=1e-5, atol=1e-5)

    print("KERNEL_OK")
</pallas_src>

<mosaic_0001>
module attributes {stable_mosaic.version = 11 : i64} {
  func.func @_static_loss_kernel(%arg0: i32, %arg1: i32, %arg2: memref<9x1xf32, #tpu.memory_space<vmem>>, %arg3: memref<1x9x256xf32, #tpu.memory_space<vmem>>, %arg4: memref<1x1x256xi32, #tpu.memory_space<vmem>>, %arg5: memref<1x1x256xf32, #tpu.memory_space<vmem>>, %arg6: memref<1x1x256xf32, #tpu.memory_space<vmem>>) attributes {dimension_semantics = [#tpu.dimension_semantics<parallel>, #tpu.dimension_semantics<arbitrary>], iteration_bounds = array<i64: 2, 1>, scalar_prefetch = 0 : i64, scratch_operands = 0 : i64, tpu.core_type = #tpu.core_type<tc>, window_params = [{pipeline_mode = #tpu.pipeline_mode<synchronous>, transform_indices = @transform_0, window_bounds = array<i64: 9, 1>}, {transform_indices = @transform_1, window_bounds = array<i64: 1, 9, 256>}, {transform_indices = @transform_2, window_bounds = array<i64: 1, 1, 256>}, {transform_indices = @transform_3, window_bounds = array<i64: 1, 1, 256>}, {transform_indices = @transform_4, window_bounds = array<i64: 1, 1, 256>}]} {
    %c0_i32 = arith.constant 0 : i32
    %0 = arith.cmpi eq, %arg1, %c0_i32 : i32
    %1 = arith.extui %0 : i1 to i32
    %c0_i32_0 = arith.constant 0 : i32
    %2 = arith.cmpi ne, %1, %c0_i32_0 : i32
    scf.if %2 {
      %cst_28 = arith.constant 0.000000e+00 : f32
      %54 = vector.broadcast %cst_28 : f32 to vector<1x1x256xf32>
      %c0_29 = arith.constant 0 : index
      %c0_30 = arith.constant 0 : index
      %c0_31 = arith.constant 0 : index
      %55 = vector.load %arg5[%c0_29, %c0_30, %c0_31] : memref<1x1x256xf32, #tpu.memory_space<vmem>>, vector<1x1x256xf32>
      tpu.vector_store %arg5[%c0_29, %c0_30, %c0_31], %54 {strides = array<i32>} : memref<1x1x256xf32, #tpu.memory_space<vmem>>, vector<1x1x256xf32>,
      %cst_32 = arith.constant 0.000000e+00 : f32
      %56 = vector.broadcast %cst_32 : f32 to vector<1x1x256xf32>
      %c0_33 = arith.constant 0 : index
      %c0_34 = arith.constant 0 : index
      %c0_35 = arith.constant 0 : index
      %57 = vector.load %arg6[%c0_33, %c0_34, %c0_35] : memref<1x1x256xf32, #tpu.memory_space<vmem>>, vector<1x1x256xf32>
      tpu.vector_store %arg6[%c0_33, %c0_34, %c0_35], %56 {strides = array<i32>} : memref<1x1x256xf32, #tpu.memory_space<vmem>>, vector<1x1x256xf32>,
    } else {
    }
    %c0 = arith.constant 0 : index
    %c0_1 = arith.constant 0 : index
    %c0_2 = arith.constant 0 : index
    %3 = vector.load %arg3[%c0, %c0_1, %c0_2] : memref<1x9x256xf32, #tpu.memory_space<vmem>>, vector<1x9x256xf32>
    %4 = vector.shape_cast %3 : vector<1x9x256xf32> to vector<9x256xf32>
    %c0_3 = arith.constant 0 : index
    %c0_4 = arith.constant 0 : index
    %c0_5 = arith.constant 0 : index
    %5 = vector.load %arg4[%c0_3, %c0_4, %c0_5] : memref<1x1x256xi32, #tpu.memory_space<vmem>>, vector<1x1x256xi32>
    %6 = vector.shape_cast %5 : vector<1x1x256xi32> to vector<1x256xi32>
    %c0_6 = arith.constant 0 : index
    %c0_7 = arith.constant 0 : index
    %7 = vector.load %arg2[%c0_6, %c0_7] : memref<9x1xf32, #tpu.memory_space<vmem>>, vector<9x1xf32>
    %c255_i32 = arith.constant 255 : i32
    %8 = vector.broadcast %c255_i32 : i32 to vector<1x256xi32>
    %9 = arith.cmpi ne, %6, %8 : vector<1x256xi32>
    %cst = arith.constant dense<0xFF800000> : vector<256xf32>
    %10 = vector.multi_reduction <maximumf>, %4, %cst [0] : vector<9x256xf32> to vector<256xf32>
    %11 = vector.shape_cast %10 : vector<256xf32> to vector<1x256xf32>
    %12 = vector.broadcast %11 : vector<1x256xf32> to vector<9x256xf32>
    %13 = arith.subf %4, %12 : vector<9x256xf32>
    %14 = math.exp %13 : vector<9x256xf32>
    %cst_8 = arith.constant dense<0.000000e+00> : vector<256xf32>
    %15 = vector.multi_reduction <add>, %14, %cst_8 [0] : vector<9x256xf32> to vector<256xf32>
    %16 = vector.shape_cast %15 : vector<256xf32> to vector<1x256xf32>
    %17 = tpu.iota {dimensions = array<i32: 0>} : vector<9x256xi32>
    %18 = vector.broadcast %6 : vector<1x256xi32> to vector<9x256xi32>
    %19 = arith.cmpi eq, %17, %18 : vector<9x256xi32>
    %20 = vector.broadcast %7 : vector<9x1xf32> to vector<9x256xf32>
    %21 = arith.mulf %20, %14 : vector<9x256xf32>
    %cst_9 = arith.constant 0.000000e+00 : f32
    %22 = vector.broadcast %cst_9 : f32 to vector<9x256xf32>
    %23 = arith.select %19, %21, %22 : vector<9x256xi1>, vector<9x256xf32>
    %cst_10 = arith.constant dense<0xFF800000> : vector<256xf32>
    %24 = vector.multi_reduction <maximumf>, %23, %cst_10 [0] : vector<9x256xf32> to vector<256xf32>
    %25 = vector.shape_cast %24 : vector<256xf32> to vector<1x256xf32>
    %26 = tpu.reciprocal %16 : vector<1x256xf32> -> vector<1x256xf32>
    %27 = arith.mulf %25, %26 : vector<1x256xf32>
    %cst_11 = arith.constant 1.000000e-07 : f32
    %cst_12 = arith.constant 0.99999988 : f32
    %28 = vector.broadcast %cst_11 : f32 to vector<1x256xf32>
    %29 = arith.maximumf %28, %27 : vector<1x256xf32>
    %30 = vector.broadcast %cst_12 : f32 to vector<1x256xf32>
    %31 = arith.minimumf %30, %29 : vector<1x256xf32>
    %32 = math.log %31 : vector<1x256xf32>
    %cst_13 = arith.constant 1.000000e+00 : f32
    %33 = vector.broadcast %cst_13 : f32 to vector<1x256xf32>
    %34 = arith.subf %33, %31 : vector<1x256xf32>
    %cst_14 = arith.constant 0.000000e+00 : f32
    %35 = vector.broadcast %cst_14 : f32 to vector<1x256xf32>
    %36 = arith.subf %35, %34 : vector<1x256xf32>
    %37 = arith.mulf %36, %32 : vector<1x256xf32>
    %cst_15 = arith.constant 0.000000e+00 : f32
    %38 = vector.broadcast %cst_15 : f32 to vector<1x256xf32>
    %39 = arith.select %9, %37, %38 : vector<1x256xi1>, vector<1x256xf32>
    %c0_16 = arith.constant 0 : index
    %c0_17 = arith.constant 0 : index
    %c0_18 = arith.constant 0 : index
    %40 = vector.load %arg5[%c0_16, %c0_17, %c0_18] : memref<1x1x256xf32, #tpu.memory_space<vmem>>, vector<1x1x256xf32>
    %41 = vector.shape_cast %40 : vector<1x1x256xf32> to vector<1x256xf32>
    %42 = arith.addf %41, %39 : vector<1x256xf32>
    %c0_19 = arith.constant 0 : index
    %c0_20 = arith.constant 0 : index
    %c0_21 = arith.constant 0 : index
    %43 = vector.load %arg5[%c0_19, %c0_20, %c0_21] : memref<1x1x256xf32, #tpu.memory_space<vmem>>, vector<1x1x256xf32>
    %44 = vector.shape_cast %43 : vector<1x1x256xf32> to vector<1x256xf32>
    %45 = vector.shape_cast %42 : vector<1x256xf32> to vector<1x1x256xf32>
    tpu.vector_store %arg5[%c0_19, %c0_20, %c0_21], %45 {strides = array<i32>} : memref<1x1x256xf32, #tpu.memory_space<vmem>>, vector<1x1x256xf32>,
    %c0_22 = arith.constant 0 : index
    %c0_23 = arith.constant 0 : index
    %c0_24 = arith.constant 0 : index
    %46 = vector.load %arg6[%c0_22, %c0_23, %c0_24] : memref<1x1x256xf32, #tpu.memory_space<vmem>>, vector<1x1x256xf32>
    %47 = vector.shape_cast %46 : vector<1x1x256xf32> to vector<1x256xf32>
    %48 = arith.extui %9 : vector<1x256xi1> to vector<1x256xi32>
    %49 = arith.sitofp %48 : vector<1x256xi32> to vector<1x256xf32>
    %50 = arith.addf %47, %49 : vector<1x256xf32>
    %c0_25 = arith.constant 0 : index
    %c0_26 = arith.constant 0 : index
    %c0_27 = arith.constant 0 : index
    %51 = vector.load %arg6[%c0_25, %c0_26, %c0_27] : memref<1x1x256xf32, #tpu.memory_space<vmem>>, vector<1x1x256xf32>
    %52 = vector.shape_cast %51 : vector<1x1x256xf32> to vector<1x256xf32>
    %53 = vector.shape_cast %50 : vector<1x256xf32> to vector<1x1x256xf32>
    tpu.vector_store %arg6[%c0_25, %c0_26, %c0_27], %53 {strides = array<i32>} : memref<1x1x256xf32, #tpu.memory_space<vmem>>, vector<1x1x256xf32>,
    return
  }
  func.func @transform_0(%arg0: i32, %arg1: i32) -> (i32, i32) {
    %c0_i32 = arith.constant 0 : i32
    %c0_i32_0 = arith.constant 0 : i32
    %c0_i32_1 = arith.constant 0 : i32
    return %c0_i32, %c0_i32_0 : i32, i32
  }
  func.func @transform_1(%arg0: i32, %arg1: i32) -> (i32, i32, i32) {
    %c0_i32 = arith.constant 0 : i32
    %c0_i32_0 = arith.constant 0 : i32
    return %arg0, %c0_i32, %arg1 : i32, i32, i32
  }
  func.func @transform_2(%arg0: i32, %arg1: i32) -> (i32, i32, i32) {
    %c0_i32 = arith.constant 0 : i32
    %c0_i32_0 = arith.constant 0 : i32
    return %arg0, %c0_i32, %arg1 : i32, i32, i32
  }
  func.func @transform_3(%arg0: i32, %arg1: i32) -> (i32, i32, i32) {
    %c0_i32 = arith.constant 0 : i32
    %c0_i32_0 = arith.constant 0 : i32
    %c0_i32_1 = arith.constant 0 : i32
    return %arg0, %c0_i32, %c0_i32_0 : i32, i32, i32
  }
  func.func @transform_4(%arg0: i32, %arg1: i32) -> (i32, i32, i32) {
    %c0_i32 = arith.constant 0 : i32
    %c0_i32_0 = arith.constant 0 : i32
    %c0_i32_1 = arith.constant 0 : i32
    return %arg0, %c0_i32, %c0_i32_0 : i32, i32, i32
  }
}

</mosaic_0001>

<bundles_post_ra>
// kernel: tpu_custom_call.1
= control target key start
LH: loop header
LB: loop body
LE: loop exit
PB: predicated region body
PF: predicated region fallthrough
CT: control target
= control target key end

     0   :  { %10 = vsyncpa [#allocation3], 0  ;;  %s1050_s0 = inlined_call_operand.vmem [shape: f32[9,1], index: 0, kind: input, shape index: {}]   ;;  %s1051_s1 = inlined_call_operand.vmem [shape: f32[2,9,256], index: 1, kind: input, shape index: {}]   ;;  %s1052_s2 = inlined_call_operand.vmem [shape: s32[2,1,256], index: 2, kind: input, shape index: {}]   ;;  %s1053_s3 = inlined_call_operand.hbm [shape: f32[2,1,256], index: 3, kind: output, shape index: {0}]   ;;  %s1054_s4 = inlined_call_operand.hbm [shape: f32[2,1,256], index: 4, kind: output, shape index: {1}]  }
   0x1   :  { %12 = vsyncpa [#allocation3 + $0x1], 0 }
   0x2   :  { %13 = vsyncpa [#allocation5], 0 }
   0x3   :  { %15 = vsyncpa [#allocation5 + $0x1], 0  ;;  %s827_s15 = smov 0   ;;  %s829_s16 = smov 0  }
   0x4   :  { %s831_s17 = smov 0   ;;  %s833_s18 = smov 0  }
   0x5   :  { %s835_s19 = smov 0   ;;  %s837_s20 = smov 0  }
   0x6 LB: > { %s583_s21 = sadd.s32 4294967295, %s795_s20   ;;  %s584_s22 = sadd.s32 4294967294, %s795_s20   ;;  %s795_s20 = sphi %s837_s20, %s21_s20   ;;  %s791_s19 = sphi %s835_s19, %s1063_s19   ;;  %s787_s18 = sphi %s833_s18, %s1062_s18   ;;  %s783_s17 = sphi %s831_s17, %s1061_s17   ;;  %s779_s16 = sphi %s829_s16, %s1060_s16   ;;  %s775_s15 = sphi %s827_s15, %s1059_s15  }
   0x7   : > { %s33_s23 = sadd.s32 1, %s791_s19  ;;  %s117_s24 = sadd.s32 1, %s783_s17 }
   0x8   : > { %p35_p0 = scmp.ge.s32.totalorder %s33_s23, 2  ;;  %p127_p1 = scmp.ne.s32.totalorder %s783_s17, %s779_s16 }
   0x9   : > { %p128_p2 = scmp.eq.s32.totalorder %s583_s21, 1  ;;  %p133_p3 = scmp.ne.s32.totalorder %s779_s16, %s775_s15 }
   0xa   : > { %s1065_s23 = smov (%p35_p0, %s33_s23), 0  ;;  %p134_p5 = scmp.eq.s32.totalorder %s584_s22, 1 }
   0xb   : > { %p867_p4 = por %p128_p2, %p127_p1  ;;  %s114_s26 = ssub.s32 %s791_s19, %s1065_s23 }
   0xc   : > { %p587_p6 = scmp.ge.s32.totalorder %s795_s20, 1  ;;  %p115_p7 = scmp.eq.s32.totalorder %s114_s26, 0 }
   0xd   : > { %p874_p8 = por %p134_p5, %p133_p3  ;;  %p206_p9 = scmp.lt.s32.totalorder %s795_s20, 3 }
   0xe   : > { %s880_s28 = scalar_select %p115_p7, %s783_s17, %s117_s24  }
   0xf   : > { %p207_p10 = pnand %p587_p6, %p206_p9 }
  0x10   : > { %v284_v0 = vld [vmem:[%s1050_s0 + $0x8] sm:$0x1] (!%p207_p10)  ;;  %p250_p11 = scmp.lt.s32.totalorder (!%p207_p10), %s787_s18, 1  ;;  %v272_v1 = vlaneseq (!%p207_p10)  ;;  %v797_v2 = vmov (!%p207_p10), 0   ;;  %v283_v4 = vld [vmem:[%s1050_s0] sm:$0xff] (!%p207_p10)  ;;  %s917_s12 = sand.u32 (!%p207_p10), 1, %s779_s16  }
  0x11   : > { %210 = sbr.rel (%p207_p10) target bundleno = 212 (0xd4), region = 32  ;;  %668 = vset.pattern.permute.xlu0 (!%p207_p10), %v797_v2  ;;  %s588_s13 = sshll.u32 (!%p207_p10), %s917_s12, 1  ;;  %v798_v12 = vmov (!%p207_p10), 0.0   ;;  %vm286_vm6 = vcmask (!%p207_p10), 1040384  }
  0x12   : > { %353 = vperm.xlu0 (!%p207_p10), %668, %v284_v0   ;;  %v887_v3 = vshrl.u32 (!%p207_p10), %v272_v1, 7  ;;  %vm920_vm4 = vcmp.lt.s32.totalorder (!%p207_p10), %v272_v1, 256  ;;  %s924_s14 = scalar_lea.vmem (!%p207_p10), [#allocation2], %s588_s13  ;;  %s248_s21 = scalar_lea.vmem (!%p207_p10), [#allocation4], %s588_s13 }
  0x13   : > { %276 = vst.msk [vmem:[%s924_s14] sm:$0x3] (!%p207_p10), %vm920_vm4, %v798_v12  ;;  %277 = vst.msk [vmem:[%s248_s21] sm:$0x3] (!%p207_p10), %vm920_vm4, %v798_v12  ;;  %s603_s30 = sshll.u32 (!%p207_p10), %s787_s18, 5  ;;  %s435_s9 = scalar_lea.sflag (!%p207_p10), [#allocation5], %s917_s12 }
  0x14   : > { %v336_v5 = vsub.s32 (!%p207_p10), 0, %v887_v3  ;;  %v340_v6 = vsub.s32 (!%p207_p10), 1, %v887_v3  ;;  %v898_v7 = vadd.s32 (!%p207_p10), 8, %v887_v3  ;;  %s947_s7 = scalar_lea.hbm (!%p207_p10), %s1054_s4, %s603_s30 }
  0x16   : > { %348 = vperm.xlu0 (!%p207_p10), %668, %v283_v4  }
  0x18   : > { %s251_s5 = scalar_select %p250_p11, %s787_s18, 1 }
  0x1a   : > { %s592_s8 = sshll.u32 %s251_s5, 1  ;;  %s602_s22 = sshll.u32 %s251_s5, 5  ;;  %v424_v14 = vld [vmem:[%s248_s21] sm:$0x3] }
  0x1b   : > { %s266_s11 = scalar_lea.vmem %s1052_s2, %s592_s8  ;;  %s257_s29 = scalar_lea.vmem %s1051_s1, %s602_s22 }
  0x1c   : > { %v900_v8 = vld [vmem:[%s266_s11] sm:$0x3]  ;;  %v280_v13 = vld [vmem:[%s257_s29 + $0x10] sm:$0x1]  ;;  %v281_v16 = vld [vmem:[%s257_s29 + $0x18] sm:$0x1] }
  0x1d   : > { %v903_v9 = vrot.slane %v900_v8, %v336_v5  ;;  %v906_v10 = vrot.slane %v900_v8, %v340_v6  ;;  %vm285_vm5 = vcmp.ne.s32.totalorder %v900_v8, 255  ;;  %v278_v18 = vld [vmem:[%s257_s29] sm:$0xff]  ;;  %v287_v19 = vsel %vm286_vm6, %v280_v13, -inf  ;;  %v279_v20 = vld [vmem:[%s257_s29 + $0x8] sm:$0xff]  ;;  %s463_s8 = sshll.u32 %s248_s21, 4  ;;  %s799_s11 = smov [#allocation4]   ;;  %s949_s8 = int_to_ptr.vmem [resolvable:$true] %s463_s8 }
  0x1e   : > { %v593_v15 = vsel %vm285_vm5, 1.0, %v798_v12  ;;  %v295_v21 = vsel %vm286_vm6, %v281_v16, -inf  ;;  %v288_v22 = vmax.f32 %v278_v18, %v287_v19  ;;  %s685_s10 = scalar_lea.vmem %s949_s8, 32  ;;  %s689_s13 = sshll.u32 %s799_s11, 4  ;;  %s690_s13 = int_to_ptr.vmem [resolvable:$false] %s689_s13 }
  0x1f   : > { %vm344_vm0 = vcmp.eq.s32.totalorder %v898_v7, %v903_v9  ;;  %vm342_vm1 = vcmp.eq.s32.totalorder %v887_v3, %v903_v9  ;;  %vm345_vm2 = vcmp.eq.s32.totalorder %v898_v7, %v906_v10  ;;  %vm343_vm3 = vcmp.eq.s32.totalorder %v887_v3, %v906_v10  ;;  %p686_p12 = scmp.ne.s32.totalorder %s949_s8, %s685_s10  ;;  %s691_s22 = scalar_lea.vmem %s690_s13, 64 }
  0x20   : > { %v427_v17 = vadd.f32 %v593_v15, %v424_v14  ;;  %v296_v23 = vmax.f32 %v279_v20, %v295_v21  ;;  %p692_p1 = scmp.lt.s32.totalorder %s949_s8, %s690_s13  ;;  %p693_p2 = scmp.lt.s32.totalorder %s691_s22, %s685_s10 }
  0x21   : > { %p687_p13 = pnand %p686_p12, %p867_p4 }
  0x22   : > { %428 = vst.msk [vmem:[%s248_s21] sm:$0x3] %vm920_vm4, %v427_v17  ;;  %p694_p3 = por %p693_p2, %p692_p1 }
  0x23   : > { %p688_p0 = pneg %p687_p13 }
  0x25   : > { %p695_p5 = pnand %p694_p3, %p688_p0 }
  0x27   : > { %698 = shalt.err (!%p695_p5)
}
  0x28   : > { %s699_s21 = scalar_lea.hbm %s947_s7, 32  ;;  %s703_s29 = scalar_lea.hbm %s1054_s4, 64 }
  0x29   : > { %p700_p6 = scmp.ne.s32.totalorder %s947_s7, %s699_s21  ;;  %p704_p10 = scmp.lt.u32.totalorder %s947_s7, %s1054_s4 }
  0x2a   : > { %p705_p11 = scmp.lt.u32.totalorder %s703_s29, %s699_s21  ;;  %p707_p13 = scmp.lt.u32.totalorder %s699_s21, %s947_s7 }
  0x2b   : > { %p701_p7 = pnand %p700_p6, %p867_p4 }
  0x2c   : > { %p706_p12 = por %p705_p11, %p704_p10 }
  0x2d   : > { %p702_p9 = pneg %p701_p7 }
  0x2e   : > { %p708_p0 = por %p707_p13, %p706_p12 }
  0x30   : > { %p709_p1 = pnand %p708_p0, %p702_p9 }
  0x32   : > { %712 = shalt.err (!%p709_p1)
}
  0x33   : > { %606 = dma.vmem_to_hbm [thread:$0]  (%p867_p4), %s949_s8, 32, %s947_s7, %s435_s9   ;;  %v289_v24 = vrot.slane %v288_v22, 4  ;;  %v297_v25 = vrot.slane %v296_v23, 4 }
  0x34   : > { %s449_s7 = sshll.u32 %s924_s14, 4  ;;  %s999_s10 = scalar_lea.hbm %s1053_s3, %s603_s30  ;;  %s1001_s7 = int_to_ptr.vmem [resolvable:$true] %s449_s7 }
  0x35   : > { %v290_v26 = vmax.f32 %v288_v22, %v289_v24  ;;  %v298_v27 = vmax.f32 %v296_v23, %v297_v25  ;;  %s430_s11 = scalar_lea.sflag [#allocation3], %s917_s12  ;;  %s713_s13 = scalar_lea.vmem %s1001_s7, 32 }
  0x36   : > { %p714_p2 = scmp.ne.s32.totalorder %s1001_s7, %s713_s13  ;;  %s801_s18 = smov [#allocation2]  }
  0x37   : > { %v291_v28 = vrot.slane %v290_v26, 2  ;;  %v299_v29 = vrot.slane %v298_v27, 2  ;;  %s717_s22 = sshll.u32 %s801_s18, 4  ;;  %s718_s22 = int_to_ptr.vmem [resolvable:$false] %s717_s22 }
  0x38   : > { %p715_p3 = pnand %p714_p2, %p867_p4  ;;  %s719_s21 = scalar_lea.vmem %s718_s22, 64 }
  0x39   : > { %v292_v30 = vmax.f32 %v290_v26, %v291_v28  ;;  %v300_v31 = vmax.f32 %v298_v27, %v299_v29  ;;  %p720_p6 = scmp.lt.s32.totalorder %s1001_s7, %s718_s22  ;;  %p721_p7 = scmp.lt.s32.totalorder %s719_s21, %s713_s13 }
  0x3a   : > { %p716_p5 = pneg %p715_p3 }
  0x3b   : > { %v293_v32 = vrot.slane %v292_v30, 1  ;;  %v301_v33 = vrot.slane %v300_v31, 1  ;;  %p722_p9 = por %p721_p7, %p720_p6 }
  0x3d   : > { %v294_v34 = vmax.f32 %v292_v30, %v293_v32  ;;  %v302_v35 = vmax.f32 %v300_v31, %v301_v33  ;;  %p723_p10 = pnand %p722_p9, %p716_p5 }
  0x3f   : > { %v305_v36 = vsub.f32 %v280_v13, %v294_v34  ;;  %v306_v37 = vsub.f32 %v281_v16, %v302_v35  ;;  %v303_v38 = vsub.f32 %v278_v18, %v294_v34  ;;  %v304_v40 = vsub.f32 %v279_v20, %v302_v35 }
  0x41   : > { %v311_v39 = vmul.f32 1.442695, %v305_v36  ;;  %v313_v41 = vmul.f32 1.442695, %v306_v37  ;;  %v307_v42 = vmul.f32 1.442695, %v303_v38 }
  0x42   : > { %v309_v43 = vmul.f32 1.442695, %v304_v40  ;;  %v800_v37 = vmov 1966171168  }
  0x43   : > { %669 = vpow2.f32 %v311_v39  ;;  %v402_v38 = vunpack.c.l.s4 %v800_v37 }
  0x44   : > { %671 = vpow2.f32 %v313_v41 }
  0x45   : > { %673 = vpow2.f32 %v307_v42  ;;  %v403_v42 = vunpack.c.0.s8 %v402_v38 }
  0x46   : > { %675 = vpow2.f32 %v309_v43 }
  0x4d   : > { %v670_v44 = vpop.eup %669 }
  0x4e   : > { %v672_v45 = vpop.eup %671  ;;  %v315_v47 = vsel %vm286_vm6, %v670_v44, 0.0 }
  0x4f   : > { %v674_v46 = vpop.eup %673  ;;  %v323_v49 = vsel %vm286_vm6, %v672_v45, 0.0 }
  0x50   : > { %v676_v48 = vpop.eup %675  ;;  %v316_v50 = vadd.f32 %v674_v46, %v315_v47 }
  0x51   : > { %v324_v51 = vadd.f32 %v676_v48, %v323_v49 }
  0x52   : > { %v317_v52 = vrot.slane %v316_v50, 4 }
  0x53   : > { %v325_v53 = vrot.slane %v324_v51, 4 }
  0x54   : > { %v318_v54 = vadd.f32 %v317_v52, %v316_v50  ;;  %v406_v50 = vsub.s32 %v403_v42, %v887_v3 }
  0x55   : > { %v326_v55 = vadd.f32 %v325_v53, %v324_v51 }
  0x56   : > { %v319_v56 = vrot.slane %v318_v54, 2 }
  0x57   : > { %v327_v57 = vrot.slane %v326_v55, 2 }
  0x58   : > { %v320_v58 = vadd.f32 %v319_v56, %v318_v54  ;;  %v417_v54 = vld [vmem:[%s924_s14] sm:$0x3] }
  0x59   : > { %v328_v59 = vadd.f32 %v327_v57, %v326_v55 }
  0x5a   : > { %v321_v61 = vrot.slane %v320_v58, 1 }
  0x5b   : > { %v329_v0 = vrot.slane %v328_v59, 1 }
  0x5c   : > { %v322_v5 = vadd.f32 %v321_v61, %v320_v58 }
  0x5d   : > { %v330_v6 = vadd.f32 %v329_v0, %v328_v59 }
  0x5e   : > { %677 = vrcp.f32 %v322_v5 }
  0x5f   : > { %679 = vrcp.f32 %v330_v6 }
  0x68   : > { %v678_v26 = vpop.eup %677 }
  0x69   : > { %v680_v28 = vpop.eup %679 }
  0x91   : > { %v354_v60 = vpop.permute.xlu0 %353 }
  0x92   : > { %v358_v62 = vmul.f32 %v670_v44, %v354_v60  ;;  %v359_v63 = vmul.f32 %v672_v45, %v354_v60 }
  0x94   : > { %v362_v1 = vsel %vm344_vm0, %v358_v62, 0.0  ;;  %v363_v2 = vsel %vm345_vm2, %v359_v63, 0.0 }
  0x95   : > { %v349_v4 = vpop.permute.xlu0 %348  ;;  %v364_v16 = vsel %vm286_vm6, %v362_v1, -inf  ;;  %v372_v17 = vsel %vm286_vm6, %v363_v2, -inf }
  0x96   : > { %v356_v12 = vmul.f32 %v674_v46, %v349_v4  ;;  %v357_v13 = vmul.f32 %v676_v48, %v349_v4 }
  0x98   : > { %v360_v14 = vsel %vm342_vm1, %v356_v12, 0.0  ;;  %v361_v15 = vsel %vm343_vm3, %v357_v13, 0.0 }
  0x99   : > { %v365_v18 = vmax.f32 %v360_v14, %v364_v16  ;;  %v373_v7 = vmax.f32 %v361_v15, %v372_v17 }
  0x9b   : > { %v366_v19 = vrot.slane %v365_v18, 4  ;;  %v374_v20 = vrot.slane %v373_v7, 4 }
  0x9d   : > { %v367_v21 = vmax.f32 %v365_v18, %v366_v19  ;;  %v375_v22 = vmax.f32 %v373_v7, %v374_v20 }
  0x9f   : > { %v368_v23 = vrot.slane %v367_v21, 2  ;;  %v376_v24 = vrot.slane %v375_v22, 2 }
  0xa1   : > { %v369_v9 = vmax.f32 %v367_v21, %v368_v23  ;;  %v377_v25 = vmax.f32 %v375_v22, %v376_v24 }
  0xa3   : > { %v370_v27 = vrot.slane %v369_v9, 1  ;;  %v378_v10 = vrot.slane %v377_v25, 1 }
  0xa5   : > { %v371_v29 = vmax.f32 %v369_v9, %v370_v27  ;;  %v379_v30 = vmax.f32 %v377_v25, %v378_v10 }
  0xa7   : > { %v382_v31 = vmul.f32 %v678_v26, %v371_v29  ;;  %v383_v32 = vmul.f32 %v680_v28, %v379_v30 }
  0xa9   : > { %v384_v33 = vmax.f32 %v382_v31, 1e-07  ;;  %v385_v34 = vmax.f32 %v383_v32, 1e-07 }
  0xab   : > { %v386_v35 = vmin.f32 %v384_v33, 0.9999999  ;;  %v387_v36 = vmin.f32 %v385_v34, 0.9999999 }
  0xad   : > { %681 = vlog2.f32 %v386_v35  ;;  %v392_v39 = vsub.f32 1.0, %v386_v35  ;;  %v393_v40 = vsub.f32 1.0, %v387_v36 }
  0xae   : > { %683 = vlog2.f32 %v387_v36 }
  0xaf   : > { %v394_v45 = vsub.f32 0.0, %v392_v39  ;;  %v395_v47 = vsub.f32 0.0, %v393_v40 }
  0xb7   : > { %v682_v41 = vpop.eup %681 }
  0xb8   : > { %v684_v43 = vpop.eup %683  ;;  %v389_v44 = vmul.f32 0.6931472, %v682_v41 }
  0xb9   : > { %v391_v46 = vmul.f32 0.6931472, %v684_v43 }
  0xba   : > { %v396_v48 = vmul.f32 %v394_v45, %v389_v44 }
  0xbb   : > { %v397_v49 = vmul.f32 %v395_v47, %v391_v46 }
  0xbd   : > { %v400_v51 = vcombine.low %v396_v48, %v397_v49 }
  0xbf   : > { %v407_v52 = vrot.slane %v400_v51, %v406_v50 }
  0xc1   : > { %v414_v53 = vrot.slane %v407_v52, %v406_v50 }
  0xc3   : > { %v416_v55 = vsel %vm285_vm5, %v414_v53, 0.0 }
  0xc4   : > { %v418_v56 = vadd.f32 %v417_v54, %v416_v55 }
  0xc6   : > { %423 = vst.msk [vmem:[%s924_s14] sm:$0x3] %vm920_vm4, %v418_v56 }
  0xc7   : > { %726 = shalt.err (!%p723_p10)
}
  0xc8   : > { %s727_s12 = scalar_lea.hbm %s999_s10, 32  ;;  %s731_s24 = scalar_lea.hbm %s1053_s3, 64 }
  0xc9   : > { %p728_p11 = scmp.ne.s32.totalorder %s999_s10, %s727_s12  ;;  %p732_p0 = scmp.lt.u32.totalorder %s999_s10, %s1053_s3 }
  0xca   : > { %p733_p1 = scmp.lt.u32.totalorder %s731_s24, %s727_s12  ;;  %p735_p3 = scmp.lt.u32.totalorder %s727_s12, %s999_s10 }
  0xcb   : > { %p729_p12 = pnand %p728_p11, %p867_p4 }
  0xcc   : > { %p734_p2 = por %p733_p1, %p732_p0 }
  0xcd   : > { %p730_p13 = pneg %p729_p12 }
  0xce   : > { %p736_p5 = por %p735_p3, %p734_p2 }
  0xd0   : > { %p737_p6 = pnand %p736_p5, %p730_p13 }
  0xd2   : > { %740 = shalt.err (!%p737_p6)
}
  0xd3   : > { %605 = dma.vmem_to_hbm [thread:$0]  (%p867_p4), %s1001_s7, 32, %s999_s10, %s430_s11  }
  0xd4 PF: > { %p616_p7 = scmp.ge.s32.totalorder %s795_s20, 2  ;;  %s475_s5 = sand.u32 1, %s775_s15  }
  0xd5   : > { %s476_s6 = scalar_lea.sflag [#allocation3], %s475_s5 }
  0xd6   : > { %p610_p9 = pnand %p616_p7, %p874_p8 }
  0xd8   : > { %766 = dma.done.wait (!%p610_p9), %s476_s6, 32  }
  0xd9   : > { %768 = vsyncadd (!%p610_p9), %s476_s6, 4294967264  ;;  %s485_s8 = scalar_lea.sflag [#allocation5], %s475_s5 }
  0xda   : > { %770 = dma.done.wait (!%p610_p9), %s485_s8, 32  }
  0xdb   : > { %772 = vsyncadd (!%p610_p9), %s485_s8, 4294967264  ;;  %s21_s20 = sadd.s32 1, %s795_s20   ;;  %s1059_s15 = smov %s779_s16 }
  0xdc   : > { %p18_p10 = scmp.ge.s32.totalorder %s21_s20, 4   ;;  %s1060_s16 = smov %s783_s17 }
  0xdd   : > { %s1061_s17 = smov %s880_s28  ;;  %s1062_s18 = smov %s791_s19 }
  0xde   : > { %s1063_s19 = smov %s1065_s23  ;;  %20 = sbr.rel (!%p18_p10) target bundleno = 6 (0x6), region = 91 }
  0xe5   :  { %490 = vsyncpa [#allocation3], 1 }
  0xe6   :  { %492 = vsyncpa [#allocation3 + $0x1], 1 }
  0xe7   :  { %493 = vsyncpa [#allocation5], 1 }
  0xe8   :  { %495 = vsyncpa [#allocation5 + $0x1], 1 }

</bundles_post_ra>
